<compile_context>
chip_gen: v5e
topology: v5e:2x2
jax: 0.10.0
libtpu: 0.0.40
codegen_flags: <defaults>
</compile_context>

<pallas_src>
import jax
import jax.numpy as jnp
from jax.experimental import pallas as pl
from jax.experimental.pallas import tpu as pltpu


def _mlp_kernel(xT_ref, w1_ref, b1_ref, w2_ref, b2_ref, w3_ref, b3_ref, oT_ref):
    """Transposed-layout MLP: activations are [features, batch_tile]."""
    xT = xT_ref[...]                                                    # [in, bt]
    # Layer 1: Linear + ReLU (f32 accumulation, f32 bias/ReLU).
    h1 = jnp.dot(w1_ref[...], xT,
                 preferred_element_type=jnp.float32) + b1_ref[...]     # [h, bt]
    h1 = jnp.maximum(h1, 0.0)
    # Layer 2: Linear + ReLU. Cast the MXU operand only; accumulator stays f32.
    h2 = jnp.dot(w2_ref[...], h1.astype(w2_ref.dtype),
                 preferred_element_type=jnp.float32) + b2_ref[...]     # [h, bt]
    h2 = jnp.maximum(h2, 0.0)
    # Layer 3: Linear -> 5 outputs per sample (lane-dense store of [5, bt]).
    out = jnp.dot(w3_ref[...], h2.astype(w3_ref.dtype),
                  preferred_element_type=jnp.float32) + b3_ref[...]    # [5, bt]
    oT_ref[...] = out.astype(oT_ref.dtype)


def simple_importance_sampler_forward(x, params, *, batch_tile=512, use_bf16=False):
    """Forward pass.

    x:      [B, in_dims] float32 (natural row-major layout).
    params: PyTorch nn.Linear layout: w* = [out, in], b* = [out, 1], float32.
    Returns [B, 5] float32.
    """
    B, in_dims = x.shape
    h_dims = params["w1"].shape[0]
    out_dims = params["w3"].shape[0]          # 5

    assert batch_tile % 128 == 0, "batch_tile must be a multiple of 128"
    n_tiles = pl.cdiv(B, batch_tile)
    B_pad = n_tiles * batch_tile

    # Transposed, batch-padded input: [in_dims, B_pad]. Padded columns yield
    # garbage outputs that are sliced off below.
    xT = jnp.transpose(x)
    if B_pad != B:
        xT = jnp.pad(xT, ((0, 0), (0, B_pad - B)))

    mxu_dtype = jnp.bfloat16 if use_bf16 else x.dtype
    xT = xT.astype(mxu_dtype)
    w1 = params["w1"].astype(mxu_dtype)
    w2 = params["w2"].astype(mxu_dtype)
    w3 = params["w3"].astype(mxu_dtype)
    b1 = params["b1"].astype(jnp.float32)
    b2 = params["b2"].astype(jnp.float32)
    b3 = params["b3"].astype(jnp.float32)

    itemsize = jnp.dtype(mxu_dtype).itemsize
    flops = 2 * B_pad * (in_dims * h_dims + h_dims * h_dims + h_dims * out_dims)
    bytes_accessed = (
        B_pad * in_dims * itemsize                                          # x
        + (in_dims * h_dims + h_dims * h_dims + h_dims * out_dims) * itemsize  # weights
        + (2 * h_dims + out_dims) * 4                                       # biases
        + B_pad * out_dims * 4                                              # output
    )

    grid_spec = pl.GridSpec(
        grid=(n_tiles,),
        in_specs=[
            pl.BlockSpec((in_dims, batch_tile), lambda i: (0, i)),   # x^T batch tile
            pl.BlockSpec((h_dims, in_dims), lambda i: (0, 0)),       # w1 (resident)
            pl.BlockSpec((h_dims, 1), lambda i: (0, 0)),             # b1
            pl.BlockSpec((h_dims, h_dims), lambda i: (0, 0)),        # w2
            pl.BlockSpec((h_dims, 1), lambda i: (0, 0)),             # b2
            pl.BlockSpec((out_dims, h_dims), lambda i: (0, 0)),      # w3
            pl.BlockSpec((out_dims, 1), lambda i: (0, 0)),           # b3
        ],
        out_specs=pl.BlockSpec((out_dims, batch_tile), lambda i: (0, i)),
    )

    outT = pl.pallas_call(
        _mlp_kernel,
        out_shape=jax.ShapeDtypeStruct((out_dims, B_pad), jnp.float32),
        grid_spec=grid_spec,
        compiler_params=pltpu.CompilerParams(dimension_semantics=("parallel",)),
        cost_estimate=pl.CostEstimate(flops=flops, transcendentals=0,
                                      bytes_accessed=bytes_accessed),
    )(xT, w1, b1, w2, b2, w3, b3)

    # Back to the module's natural [B, 5] layout (tiny: 5 * B elements).
    return jnp.transpose(outT)[:B]


def init_params(key, in_dims, h_dims, out_dims=5):
    """Deterministic synthetic init (uniform like PyTorch's default),
    stored in PyTorch layout: w = [out, in], b = [out, 1]."""
    ks = jax.random.split(key, 6)

    def lin(kw, kb, fan_in, fan_out):
        bound = 1.0 / jnp.sqrt(jnp.float32(fan_in))
        w = jax.random.uniform(kw, (fan_out, fan_in), jnp.float32, -bound, bound)
        b = jax.random.uniform(kb, (fan_out, 1), jnp.float32, -bound, bound)
        return w, b

    w1, b1 = lin(ks[0], ks[1], in_dims, h_dims)
    w2, b2 = lin(ks[2], ks[3], h_dims, h_dims)
    w3, b3 = lin(ks[4], ks[5], h_dims, out_dims)
    return {"w1": w1, "b1": b1, "w2": w2, "b2": b2, "w3": w3, "b3": b3}


def reference_forward(x, p):
    h1 = jnp.maximum(x @ p["w1"].T + p["b1"].T, 0.0)
    h2 = jnp.maximum(h1 @ p["w2"].T + p["b2"].T, 0.0)
    return h2 @ p["w3"].T + p["b3"].T


if __name__ == "__main__":
    key = jax.random.PRNGKey(0)
    k_x, k_p = jax.random.split(key)

    B, in_dims, h_dims = 8, 16, 32  # small shapes consistent with the module
    x = jax.random.normal(k_x, (B, in_dims), jnp.float32)
    params = init_params(k_p, in_dims, h_dims)

    ref = reference_forward(x, params)

    # f32 path (matches reference up to accumulation order).
    out = simple_importance_sampler_forward(x, params, batch_tile=512, use_bf16=False)
    out = jax.block_until_ready(out)
    assert out.shape == (B, 5), out.shape
    assert jnp.allclose(out, ref, atol=1e-5, rtol=1e-5), "f32 mismatch vs reference"

    # bf16 storage path (recommended for v6e / v7x); f32 accumulation in-kernel.
    out_bf16 = simple_importance_sampler_forward(x, params, batch_tile=512, use_bf16=True)
    out_bf16 = jax.block_until_ready(out_bf16)
    assert jnp.allclose(out_bf16, ref, atol=1e-1, rtol=1e-1), "bf16 mismatch vs reference"

    print("KERNEL_OK")
</pallas_src>

<mosaic_0001>
module attributes {stable_mosaic.version = 11 : i64} {
  func.func @_mlp_kernel(%arg0: i32, %arg1: memref<16x512xf32, #tpu.memory_space<vmem>>, %arg2: memref<32x16xf32, #tpu.memory_space<vmem>>, %arg3: memref<32x1xf32, #tpu.memory_space<vmem>>, %arg4: memref<32x32xf32, #tpu.memory_space<vmem>>, %arg5: memref<32x1xf32, #tpu.memory_space<vmem>>, %arg6: memref<5x32xf32, #tpu.memory_space<vmem>>, %arg7: memref<5x1xf32, #tpu.memory_space<vmem>>, %arg8: memref<5x512xf32, #tpu.memory_space<vmem>>) attributes {dimension_semantics = [#tpu.dimension_semantics<parallel>], iteration_bounds = array<i64: 1>, scalar_prefetch = 0 : i64, scratch_operands = 0 : i64, tpu.core_type = #tpu.core_type<tc>, window_params = [{transform_indices = @transform_0, window_bounds = array<i64: 16, 512>}, {pipeline_mode = #tpu.pipeline_mode<synchronous>, transform_indices = @transform_1, window_bounds = array<i64: 32, 16>}, {pipeline_mode = #tpu.pipeline_mode<synchronous>, transform_indices = @transform_2, window_bounds = array<i64: 32, 1>}, {pipeline_mode = #tpu.pipeline_mode<synchronous>, transform_indices = @transform_3, window_bounds = array<i64: 32, 32>}, {pipeline_mode = #tpu.pipeline_mode<synchronous>, transform_indices = @transform_4, window_bounds = array<i64: 32, 1>}, {pipeline_mode = #tpu.pipeline_mode<synchronous>, transform_indices = @transform_5, window_bounds = array<i64: 5, 32>}, {pipeline_mode = #tpu.pipeline_mode<synchronous>, transform_indices = @transform_6, window_bounds = array<i64: 5, 1>}, {transform_indices = @transform_7, window_bounds = array<i64: 5, 512>}]} {
    %c0 = arith.constant 0 : index
    %c0_0 = arith.constant 0 : index
    %0 = vector.load %arg1[%c0, %c0_0] : memref<16x512xf32, #tpu.memory_space<vmem>>, vector<16x512xf32>
    %c0_1 = arith.constant 0 : index
    %c0_2 = arith.constant 0 : index
    %1 = vector.load %arg2[%c0_1, %c0_2] : memref<32x16xf32, #tpu.memory_space<vmem>>, vector<32x16xf32>
    %cst = arith.constant dense<0.000000e+00> : vector<32x512xf32>
    %2 = tpu.matmul %1, %0, %cst {dimension_numbers = #tpu.dot_dimension_numbers<[1], [0], [0], [1], [0, 0, 1, 1], [], []>} : vector<32x16xf32>, vector<16x512xf32>, vector<32x512xf32> -> vector<32x512xf32>
    %c0_3 = arith.constant 0 : index
    %c0_4 = arith.constant 0 : index
    %3 = vector.load %arg3[%c0_3, %c0_4] : memref<32x1xf32, #tpu.memory_space<vmem>>, vector<32x1xf32>
    %4 = vector.broadcast %3 : vector<32x1xf32> to vector<32x512xf32>
    %5 = arith.addf %2, %4 : vector<32x512xf32>
    %cst_5 = arith.constant 0.000000e+00 : f32
    %6 = vector.broadcast %cst_5 : f32 to vector<32x512xf32>
    %7 = arith.maximumf %5, %6 : vector<32x512xf32>
    %c0_6 = arith.constant 0 : index
    %c0_7 = arith.constant 0 : index
    %8 = vector.load %arg4[%c0_6, %c0_7] : memref<32x32xf32, #tpu.memory_space<vmem>>, vector<32x32xf32>
    %cst_8 = arith.constant dense<0.000000e+00> : vector<32x512xf32>
    %9 = tpu.matmul %8, %7, %cst_8 {dimension_numbers = #tpu.dot_dimension_numbers<[1], [0], [0], [1], [0, 0, 1, 1], [], []>} : vector<32x32xf32>, vector<32x512xf32>, vector<32x512xf32> -> vector<32x512xf32>
    %c0_9 = arith.constant 0 : index
    %c0_10 = arith.constant 0 : index
    %10 = vector.load %arg5[%c0_9, %c0_10] : memref<32x1xf32, #tpu.memory_space<vmem>>, vector<32x1xf32>
    %11 = vector.broadcast %10 : vector<32x1xf32> to vector<32x512xf32>
    %12 = arith.addf %9, %11 : vector<32x512xf32>
    %cst_11 = arith.constant 0.000000e+00 : f32
    %13 = vector.broadcast %cst_11 : f32 to vector<32x512xf32>
    %14 = arith.maximumf %12, %13 : vector<32x512xf32>
    %c0_12 = arith.constant 0 : index
    %c0_13 = arith.constant 0 : index
    %15 = vector.load %arg6[%c0_12, %c0_13] : memref<5x32xf32, #tpu.memory_space<vmem>>, vector<5x32xf32>
    %cst_14 = arith.constant dense<0.000000e+00> : vector<5x512xf32>
    %16 = tpu.matmul %15, %14, %cst_14 {dimension_numbers = #tpu.dot_dimension_numbers<[1], [0], [0], [1], [0, 0, 1, 1], [], []>} : vector<5x32xf32>, vector<32x512xf32>, vector<5x512xf32> -> vector<5x512xf32>
    %c0_15 = arith.constant 0 : index
    %c0_16 = arith.constant 0 : index
    %17 = vector.load %arg7[%c0_15, %c0_16] : memref<5x1xf32, #tpu.memory_space<vmem>>, vector<5x1xf32>
    %18 = vector.broadcast %17 : vector<5x1xf32> to vector<5x512xf32>
    %19 = arith.addf %16, %18 : vector<5x512xf32>
    %c0_17 = arith.constant 0 : index
    %c0_18 = arith.constant 0 : index
    %20 = vector.load %arg8[%c0_17, %c0_18] : memref<5x512xf32, #tpu.memory_space<vmem>>, vector<5x512xf32>
    tpu.vector_store %arg8[%c0_17, %c0_18], %19 {strides = array<i32>} : memref<5x512xf32, #tpu.memory_space<vmem>>, vector<5x512xf32>,
    return
  }
  func.func @transform_0(%arg0: i32) -> (i32, i32) {
    %c0_i32 = arith.constant 0 : i32
    %c0_i32_0 = arith.constant 0 : i32
    return %c0_i32, %arg0 : i32, i32
  }
  func.func @transform_1(%arg0: i32) -> (i32, i32) {
    %c0_i32 = arith.constant 0 : i32
    %c0_i32_0 = arith.constant 0 : i32
    %c0_i32_1 = arith.constant 0 : i32
    return %c0_i32, %c0_i32_0 : i32, i32
  }
  func.func @transform_2(%arg0: i32) -> (i32, i32) {
    %c0_i32 = arith.constant 0 : i32
    %c0_i32_0 = arith.constant 0 : i32
    %c0_i32_1 = arith.constant 0 : i32
    return %c0_i32, %c0_i32_0 : i32, i32
  }
  func.func @transform_3(%arg0: i32) -> (i32, i32) {
    %c0_i32 = arith.constant 0 : i32
    %c0_i32_0 = arith.constant 0 : i32
    %c0_i32_1 = arith.constant 0 : i32
    return %c0_i32, %c0_i32_0 : i32, i32
  }
  func.func @transform_4(%arg0: i32) -> (i32, i32) {
    %c0_i32 = arith.constant 0 : i32
    %c0_i32_0 = arith.constant 0 : i32
    %c0_i32_1 = arith.constant 0 : i32
    return %c0_i32, %c0_i32_0 : i32, i32
  }
  func.func @transform_5(%arg0: i32) -> (i32, i32) {
    %c0_i32 = arith.constant 0 : i32
    %c0_i32_0 = arith.constant 0 : i32
    %c0_i32_1 = arith.constant 0 : i32
    return %c0_i32, %c0_i32_0 : i32, i32
  }
  func.func @transform_6(%arg0: i32) -> (i32, i32) {
    %c0_i32 = arith.constant 0 : i32
    %c0_i32_0 = arith.constant 0 : i32
    %c0_i32_1 = arith.constant 0 : i32
    return %c0_i32, %c0_i32_0 : i32, i32
  }
  func.func @transform_7(%arg0: i32) -> (i32, i32) {
    %c0_i32 = arith.constant 0 : i32
    %c0_i32_0 = arith.constant 0 : i32
    return %c0_i32, %arg0 : i32, i32
  }
}

</mosaic_0001>

<bundles_post_ra>
// kernel: tpu_custom_call.1
= control target key start
LH: loop header
LB: loop body
LE: loop exit
PB: predicated region body
PF: predicated region fallthrough
CT: control target
= control target key end

     0   :  { %vm63_vm0 = vcmask 130048   ;;  %s717_s0 = inlined_call_operand.vmem [shape: f32[16,512], index: 0, kind: input, shape index: {}]   ;;  %s718_s1 = inlined_call_operand.vmem [shape: f32[32,16], index: 1, kind: input, shape index: {}]   ;;  %s719_s2 = inlined_call_operand.vmem [shape: f32[32,1], index: 2, kind: input, shape index: {}]   ;;  %s720_s3 = inlined_call_operand.vmem [shape: f32[32,32], index: 3, kind: input, shape index: {}]   ;;  %s721_s4 = inlined_call_operand.vmem [shape: f32[32,1], index: 4, kind: input, shape index: {}]   ;;  %s722_s5 = inlined_call_operand.vmem [shape: f32[5,32], index: 5, kind: input, shape index: {}]   ;;  %s723_s6 = inlined_call_operand.vmem [shape: f32[5,1], index: 6, kind: input, shape index: {}]   ;;  %s724_s7 = inlined_call_operand.hbm [shape: f32[5,512], index: 7, kind: output, shape index: {}]  }
   0x1   :  { %v31_v0 = vld [vmem:[%s717_s0 + $0x20] sm:$0xff]  ;;  %v32_v1 = vld [vmem:[%s717_s0 + $0x28] sm:$0xff]  ;;  %v33_v2 = vld [vmem:[%s717_s0 + $0x30] sm:$0xff] }
   0x2   :  { %90 = vmatpush.msra.mxu0 %v31_v0  ;;  %119 = vmatpush.msra.mxu1 %v32_v1  ;;  %v34_v3 = vld [vmem:[%s717_s0 + $0x38] sm:$0xff]  ;;  %v27_v4 = vld [vmem:[%s717_s0] sm:$0xff]  ;;  %v28_v5 = vld [vmem:[%s717_s0 + $0x8] sm:$0xff] }
   0x3   :  { %148 = vmatpush.msra.mxu2 %v33_v2  ;;  %177 = vmatpush.msra.mxu3 %v34_v3  ;;  %v29_v6 = vld [vmem:[%s717_s0 + $0x10] sm:$0xff]  ;;  %v30_v7 = vld [vmem:[%s717_s0 + $0x18] sm:$0xff]  ;;  %v35_v8 = vld [vmem:[%s718_s1] sm:$0xff] }
   0x4   :  { %91 = vmatpush.msra.mxu0 %v27_v4  ;;  %120 = vmatpush.msra.mxu1 %v28_v5  ;;  %v40_v9 = vld [vmem:[%s719_s2 + $0x8] sm:$0xff]  ;;  %v42_v10 = vld [vmem:[%s719_s2 + $0x18] sm:$0xff] }
   0x5   :  { %149 = vmatpush.msra.mxu2 %v29_v6  ;;  %178 = vmatpush.msra.mxu3 %v30_v7 }
   0x6   :  { %491 = vmatmul.msk.f32.vlgmr.msra.gmra.mxu0 %vm63_vm0, %v35_v8  ;;  %495 = vmatmul.msk.f32.vlgmr.msra.gmra.mxu1 %vm63_vm0, %v35_v8 }
   0x7   :  { %499 = vmatmul.msk.f32.vlgmr.msra.gmra.mxu2 %vm63_vm0, %v35_v8  ;;  %503 = vmatmul.msk.f32.vlgmr.msra.gmra.mxu3 %vm63_vm0, %v35_v8 }
   0x8   :  { %12 = vsyncpa [#allocation3], 0  ;;  %v558_v11 = vmov 0   ;;  %v36_v12 = vld [vmem:[%s718_s1 + $0x8] sm:$0xff]  ;;  %v39_v13 = vld [vmem:[%s719_s2] sm:$0xff]  ;;  %vm236_vm1 = vcmask 261120  }
   0x9   :  { %530 = vset.pattern.permute.xlu1 %v558_v11  ;;  %529 = vset.pattern.permute.xlu0 %v558_v11  ;;  %v41_v14 = vld [vmem:[%s719_s2 + $0x10] sm:$0xff]  ;;  %v213_v16 = vld [vmem:[%s721_s4 + $0x8] sm:$0xff]  ;;  %v212_v17 = vld [vmem:[%s721_s4] sm:$0xff]  ;;  %s482_s26 = sshll.u32 %s724_s7, 4  ;;  %s483_s26 = int_to_ptr.hbm [resolvable:$true] %s482_s26 }
   0xa   :  { %50 = vperm.xlu1 %530, %v40_v9   ;;  %60 = vperm.xlu0 %529, %v42_v10   ;;  %v37_v15 = vld [vmem:[%s718_s1 + $0x10] sm:$0xff]  ;;  %v38_v18 = vld [vmem:[%s718_s1 + $0x18] sm:$0xff]  ;;  %v208_v63 = vld [vmem:[%s720_s3] sm:$0xff] }
   0xb   :  { %531 = vset.pattern.permute.xlu2 %v558_v11  ;;  %v215_v4 = vld [vmem:[%s721_s4 + $0x18] sm:$0xff]  ;;  %v209_v9 = vld [vmem:[%s720_s3 + $0x8] sm:$0xff]  ;;  %v214_v10 = vld [vmem:[%s721_s4 + $0x10] sm:$0xff] }
   0xc   :  { %233 = vperm.xlu2 %531, %v215_v4   ;;  %v210_v11 = vld [vmem:[%s720_s3 + $0x10] sm:$0xff] }
   0xe   :  { %492 = vmatmul.msk.f32.gmra.mxu0 %vm63_vm0, %v36_v12  ;;  %496 = vmatmul.msk.f32.gmra.mxu1 %vm63_vm0, %v36_v12 }
   0xf   :  { %500 = vmatmul.msk.f32.gmra.mxu2 %vm63_vm0, %v36_v12  ;;  %504 = vmatmul.msk.f32.gmra.mxu3 %vm63_vm0, %v36_v12  ;;  %v382_v12 = vld [vmem:[%s723_s6] sm:$0x1f] }
  0x12   :  { %45 = vperm.xlu1 %530, %v39_v13   ;;  %55 = vperm.xlu0 %529, %v41_v14   ;;  %v211_v13 = vld [vmem:[%s720_s3 + $0x18] sm:$0xff] }
  0x14   :  { %228 = vperm.xlu2 %531, %v214_v10  }
  0x16   :  { %493 = vmatmul.msk.f32.gmra.mxu0 %vm63_vm0, %v37_v15  ;;  %497 = vmatmul.msk.f32.gmra.mxu1 %vm63_vm0, %v37_v15 }
  0x17   :  { %501 = vmatmul.msk.f32.gmra.mxu2 %vm63_vm0, %v37_v15  ;;  %505 = vmatmul.msk.f32.gmra.mxu3 %vm63_vm0, %v37_v15 }
  0x1a   :  { %223 = vperm.xlu0 %529, %v213_v16   ;;  %218 = vperm.xlu1 %530, %v212_v17  }
  0x1c   :  { %385 = vperm.xlu2 %531, %v382_v12  }
  0x1e   :  { %494 = vmatmul.msk.f32.gmra.mxu0 %vm63_vm0, %v38_v18  ;;  %498 = vmatmul.msk.f32.gmra.mxu1 %vm63_vm0, %v38_v18 }
  0x1f   :  { %502 = vmatmul.msk.f32.gmra.mxu2 %vm63_vm0, %v38_v18  ;;  %506 = vmatmul.msk.f32.gmra.mxu3 %vm63_vm0, %v38_v18 }
  0x66   :  { %v234_v18 = vpop.permute.xlu2 %233 }
  0x7c   :  { %v61_v25 = vpop.permute.xlu0 %60  ;;  %v51_v30 = vpop.permute.xlu1 %50 }
  0x83   :  { %v93_v19 = vpop.f32.mrf.mxu0  ;;  %v122_v20 = vpop.f32.mrf.mxu1 }
  0x84   :  { %v56_v31 = vpop.permute.xlu0 %55  ;;  %v46_v44 = vpop.permute.xlu1 %45 }
  0x85   :  { %v94_v47 = vadd.f32 %v93_v19, %v46_v44  ;;  %v123_v48 = vadd.f32 %v122_v20, %v46_v44 }
  0x87   :  { %v192_v57 = vmax.f32 %v94_v47, 0.0  ;;  %v193_v58 = vmax.f32 %v123_v48, 0.0  ;;  %v381_v48 = vld [vmem:[%s722_s5] sm:$0x1f]  ;;  %s559_s5 = smov [#allocation2]  }
  0x88   :  { %s480_s23 = sshll.u32 %s559_s5, 4  ;;  %s481_s23 = int_to_ptr.vmem [resolvable:$true] %s480_s23 }
  0x8a   :  { %v151_v21 = vpop.f32.mrf.mxu2  ;;  %v180_v22 = vpop.f32.mrf.mxu3 }
  0x8b   :  { %v96_v23 = vpop.f32.mrf.mxu0  ;;  %v125_v24 = vpop.f32.mrf.mxu1  ;;  %v152_v0 = vadd.f32 %v151_v21, %v46_v44  ;;  %v181_v1 = vadd.f32 %v180_v22, %v46_v44 }
  0x8c   :  { %v97_v40 = vadd.f32 %v96_v23, %v51_v30  ;;  %v126_v41 = vadd.f32 %v125_v24, %v51_v30 }
  0x8d   :  { %v194_v7 = vmax.f32 %v152_v0, 0.0  ;;  %v195_v8 = vmax.f32 %v181_v1, 0.0 }
  0x8e   :  { %v196_v49 = vmax.f32 %v97_v40, 0.0  ;;  %v197_v50 = vmax.f32 %v126_v41, 0.0 }
  0x92   :  { %v154_v26 = vpop.f32.mrf.mxu2  ;;  %v183_v27 = vpop.f32.mrf.mxu3 }
  0x93   :  { %v99_v28 = vpop.f32.mrf.mxu0  ;;  %v128_v29 = vpop.f32.mrf.mxu1  ;;  %v155_v59 = vadd.f32 %v154_v26, %v51_v30  ;;  %v184_v60 = vadd.f32 %v183_v27, %v51_v30 }
  0x94   :  { %v100_v36 = vadd.f32 %v99_v28, %v56_v31  ;;  %v129_v37 = vadd.f32 %v128_v29, %v56_v31  ;;  %v224_v30 = vpop.permute.xlu0 %223 }
  0x95   :  { %v198_v5 = vmax.f32 %v155_v59, 0.0  ;;  %v199_v6 = vmax.f32 %v184_v60, 0.0 }
  0x96   :  { %v200_v45 = vmax.f32 %v100_v36, 0.0  ;;  %v201_v46 = vmax.f32 %v129_v37, 0.0 }
  0x9a   :  { %v157_v32 = vpop.f32.mrf.mxu2  ;;  %v186_v33 = vpop.f32.mrf.mxu3 }
  0x9b   :  { %v102_v34 = vpop.f32.mrf.mxu0  ;;  %v131_v35 = vpop.f32.mrf.mxu1  ;;  %v158_v53 = vadd.f32 %v157_v32, %v56_v31  ;;  %v187_v54 = vadd.f32 %v186_v33, %v56_v31 }
  0x9c   :  { %v103_v38 = vadd.f32 %v102_v34, %v61_v25  ;;  %v132_v39 = vadd.f32 %v131_v35, %v61_v25  ;;  %v219_v35 = vpop.permute.xlu1 %218 }
  0x9d   :  { %v202_v2 = vmax.f32 %v158_v53, 0.0  ;;  %v203_v3 = vmax.f32 %v187_v54, 0.0 }
  0x9e   :  { %v204_v42 = vmax.f32 %v103_v38, 0.0  ;;  %v205_v43 = vmax.f32 %v132_v39, 0.0 }
  0xa0   :  { %261 = vmatpush.msrb.mxu0 %v204_v42  ;;  %290 = vmatpush.msrb.mxu1 %v205_v43 }
  0xa2   :  { %v160_v51 = vpop.f32.mrf.mxu2  ;;  %v189_v52 = vpop.f32.mrf.mxu3  ;;  %262 = vmatpush.msrb.mxu0 %v200_v45  ;;  %291 = vmatpush.msrb.mxu1 %v201_v46 }
  0xa3   :  { %v161_v55 = vadd.f32 %v160_v51, %v61_v25  ;;  %v190_v56 = vadd.f32 %v189_v52, %v61_v25  ;;  %v229_v25 = vpop.permute.xlu2 %228 }
  0xa4   :  { %263 = vmatpush.msrb.mxu0 %v196_v49  ;;  %292 = vmatpush.msrb.mxu1 %v197_v50 }
  0xa5   :  { %v206_v61 = vmax.f32 %v161_v55, 0.0  ;;  %v207_v62 = vmax.f32 %v190_v56, 0.0 }
  0xa6   :  { %264 = vmatpush.msrb.mxu0 %v192_v57  ;;  %293 = vmatpush.msrb.mxu1 %v193_v58 }
  0xa7   :  { %319 = vmatpush.msrb.mxu2 %v206_v61  ;;  %348 = vmatpush.msrb.mxu3 %v207_v62 }
  0xa8   :  { %507 = vmatmul.msk.f32.vlgmr.msrb.gmra.mxu0 %vm236_vm1, %v208_v63  ;;  %511 = vmatmul.msk.f32.vlgmr.msrb.gmra.mxu1 %vm236_vm1, %v208_v63 }
  0xa9   :  { %320 = vmatpush.msrb.mxu2 %v202_v2  ;;  %349 = vmatpush.msrb.mxu3 %v203_v3 }
  0xab   :  { %321 = vmatpush.msrb.mxu2 %v198_v5  ;;  %350 = vmatpush.msrb.mxu3 %v199_v6  ;;  %v386_v3 = vpop.permute.xlu2 %385 }
  0xad   :  { %322 = vmatpush.msrb.mxu2 %v194_v7  ;;  %351 = vmatpush.msrb.mxu3 %v195_v8 }
  0xae   :  { %515 = vmatmul.msk.f32.vlgmr.msrb.gmra.mxu2 %vm236_vm1, %v208_v63  ;;  %519 = vmatmul.msk.f32.vlgmr.msrb.gmra.mxu3 %vm236_vm1, %v208_v63 }
  0xb0   :  { %508 = vmatmul.msk.f32.gmra.mxu0 %vm236_vm1, %v209_v9  ;;  %512 = vmatmul.msk.f32.gmra.mxu1 %vm236_vm1, %v209_v9 }
  0xb6   :  { %516 = vmatmul.msk.f32.gmra.mxu2 %vm236_vm1, %v209_v9  ;;  %520 = vmatmul.msk.f32.gmra.mxu3 %vm236_vm1, %v209_v9 }
  0xb8   :  { %509 = vmatmul.msk.f32.gmra.mxu0 %vm236_vm1, %v210_v11  ;;  %513 = vmatmul.msk.f32.gmra.mxu1 %vm236_vm1, %v210_v11 }
  0xbe   :  { %517 = vmatmul.msk.f32.gmra.mxu2 %vm236_vm1, %v210_v11  ;;  %521 = vmatmul.msk.f32.gmra.mxu3 %vm236_vm1, %v210_v11 }
  0xc0   :  { %510 = vmatmul.msk.f32.gmra.mxu0 %vm236_vm1, %v211_v13  ;;  %514 = vmatmul.msk.f32.gmra.mxu1 %vm236_vm1, %v211_v13 }
  0xc6   :  { %518 = vmatmul.msk.f32.gmra.mxu2 %vm236_vm1, %v211_v13  ;;  %522 = vmatmul.msk.f32.gmra.mxu3 %vm236_vm1, %v211_v13 }
 0x125   :  { %v266_v14 = vpop.f32.mrf.mxu0  ;;  %v295_v15 = vpop.f32.mrf.mxu1 }
 0x126   :  { %v267_v42 = vadd.f32 %v266_v14, %v219_v35  ;;  %v296_v43 = vadd.f32 %v295_v15, %v219_v35 }
 0x128   :  { %v365_v46 = vmax.f32 %v267_v42, 0.0  ;;  %v366_v47 = vmax.f32 %v296_v43, 0.0 }
 0x12d   :  { %v269_v16 = vpop.f32.mrf.mxu0  ;;  %v298_v17 = vpop.f32.mrf.mxu1 }
 0x12e   :  { %v270_v33 = vadd.f32 %v269_v16, %v224_v30  ;;  %v299_v34 = vadd.f32 %v298_v17, %v224_v30 }
 0x130   :  { %v369_v44 = vmax.f32 %v270_v33, 0.0  ;;  %v370_v45 = vmax.f32 %v299_v34, 0.0 }
 0x131   :  { %v324_v19 = vpop.f32.mrf.mxu2  ;;  %v353_v20 = vpop.f32.mrf.mxu3 }
 0x132   :  { %v325_v59 = vadd.f32 %v324_v19, %v219_v35  ;;  %v354_v60 = vadd.f32 %v353_v20, %v219_v35 }
 0x134   :  { %v367_v1 = vmax.f32 %v325_v59, 0.0  ;;  %v368_v2 = vmax.f32 %v354_v60, 0.0 }
 0x135   :  { %v272_v21 = vpop.f32.mrf.mxu0  ;;  %v301_v22 = vpop.f32.mrf.mxu1 }
 0x136   :  { %v273_v26 = vadd.f32 %v272_v21, %v229_v25  ;;  %v302_v27 = vadd.f32 %v301_v22, %v229_v25 }
 0x138   :  { %v373_v38 = vmax.f32 %v273_v26, 0.0  ;;  %v374_v39 = vmax.f32 %v302_v27, 0.0 }
 0x139   :  { %v327_v23 = vpop.f32.mrf.mxu2  ;;  %v356_v24 = vpop.f32.mrf.mxu3 }
 0x13a   :  { %v328_v55 = vadd.f32 %v327_v23, %v224_v30  ;;  %v357_v56 = vadd.f32 %v356_v24, %v224_v30 }
 0x13c   :  { %v371_v63 = vmax.f32 %v328_v55, 0.0  ;;  %v372_v0 = vmax.f32 %v357_v56, 0.0 }
 0x13d   :  { %v275_v28 = vpop.f32.mrf.mxu0  ;;  %v304_v29 = vpop.f32.mrf.mxu1 }
 0x13e   :  { %v276_v31 = vadd.f32 %v275_v28, %v234_v18  ;;  %v305_v32 = vadd.f32 %v304_v29, %v234_v18 }
 0x140   :  { %v377_v36 = vmax.f32 %v276_v31, 0.0  ;;  %v378_v37 = vmax.f32 %v305_v32, 0.0 }
 0x141   :  { %v330_v40 = vpop.f32.mrf.mxu2  ;;  %v359_v41 = vpop.f32.mrf.mxu3 }
 0x142   :  { %403 = vmatpush.msra.mxu0 %v377_v36  ;;  %423 = vmatpush.msra.mxu1 %v378_v37  ;;  %v331_v51 = vadd.f32 %v330_v40, %v229_v25  ;;  %v360_v52 = vadd.f32 %v359_v41, %v229_v25 }
 0x144   :  { %404 = vmatpush.msra.mxu0 %v373_v38  ;;  %424 = vmatpush.msra.mxu1 %v374_v39  ;;  %v375_v61 = vmax.f32 %v331_v51, 0.0  ;;  %v376_v62 = vmax.f32 %v360_v52, 0.0 }
 0x146   :  { %405 = vmatpush.msra.mxu0 %v369_v44  ;;  %425 = vmatpush.msra.mxu1 %v370_v45 }
 0x148   :  { %406 = vmatpush.msra.mxu0 %v365_v46  ;;  %426 = vmatpush.msra.mxu1 %v366_v47 }
 0x149   :  { %v333_v49 = vpop.f32.mrf.mxu2  ;;  %v362_v50 = vpop.f32.mrf.mxu3  ;;  %523 = vmatmul.msk.f32.vlgmr.msra.gmra.mxu0 %vm236_vm1, %v381_v48  ;;  %524 = vmatmul.msk.f32.vlgmr.msra.gmra.mxu1 %vm236_vm1, %v381_v48 }
 0x14a   :  { %v334_v53 = vadd.f32 %v333_v49, %v234_v18  ;;  %v363_v54 = vadd.f32 %v362_v50, %v234_v18 }
 0x14c   :  { %v379_v57 = vmax.f32 %v334_v53, 0.0  ;;  %v380_v58 = vmax.f32 %v363_v54, 0.0 }
 0x14e   :  { %443 = vmatpush.msra.mxu2 %v379_v57  ;;  %463 = vmatpush.msra.mxu3 %v380_v58 }
 0x150   :  { %444 = vmatpush.msra.mxu2 %v375_v61  ;;  %464 = vmatpush.msra.mxu3 %v376_v62 }
 0x152   :  { %445 = vmatpush.msra.mxu2 %v371_v63  ;;  %465 = vmatpush.msra.mxu3 %v372_v0 }
 0x154   :  { %446 = vmatpush.msra.mxu2 %v367_v1  ;;  %466 = vmatpush.msra.mxu3 %v368_v2 }
 0x155   :  { %525 = vmatmul.msk.f32.vlgmr.msra.gmra.mxu2 %vm236_vm1, %v381_v48  ;;  %526 = vmatmul.msk.f32.vlgmr.msra.gmra.mxu3 %vm236_vm1, %v381_v48 }
 0x1c6   :  { %v408_v4 = vpop.f32.mrf.mxu0  ;;  %v428_v5 = vpop.f32.mrf.mxu1 }
 0x1c7   :  { %v409_v6 = vadd.f32 %v408_v4, %v386_v3  ;;  %v429_v7 = vadd.f32 %v428_v5, %v386_v3 }
 0x1c9   :  { %471 = vst [vmem:[#allocation2] sm:$0x1f] %v409_v6 }
 0x1ca   :  { %472 = vst [vmem:[#allocation2 + $0x8] sm:$0x1f] %v429_v7 }
 0x1d8   :  { %v448_v8 = vpop.f32.mrf.mxu2  ;;  %v468_v9 = vpop.f32.mrf.mxu3 }
 0x1d9   :  { %v449_v10 = vadd.f32 %v448_v8, %v386_v3  ;;  %v469_v11 = vadd.f32 %v468_v9, %v386_v3 }
 0x1db   :  { %473 = vst [vmem:[#allocation2 + $0x10] sm:$0x1f] %v449_v10 }
 0x1dc   :  { %474 = vst [vmem:[#allocation2 + $0x18] sm:$0x1f] %v469_v11 }
 0x1dd   :  { %485 = dma.vmem_to_hbm [thread:$0]  %s481_s23, 512, %s483_s26, [#allocation3]  }
 0x1de   :  { %556 = dma.done.wait [#allocation3], 512  }
 0x1df   :  { %557 = vsyncadd [#allocation3], 4294966784 }
 0x1e0   :  { %490 = vsyncpa [#allocation3], 1 }

</bundles_post_ra>
